<compile_context>
chip_gen: v7x
topology: tpu7x:2x2x1
jax: 0.10.0
libtpu: 0.0.40
codegen_flags: <defaults>
</compile_context>

<pallas_src>
import math

import jax
import jax.numpy as jnp
from jax.experimental import pallas as pl
from jax.experimental.pallas import tpu as pltpu


# ----------------------------------------------------------------------------
# Chip-generation tuning
# ----------------------------------------------------------------------------
def _chip_defaults():
    """Return (target_block_bytes_per_array, num_tensorcores) for this chip."""
    target, n_cores = 2 << 20, 1            # safe default (v6e-like)
    kind = ""
    try:
        kind = jax.devices()[0].device_kind.lower()
    except Exception:
        pass
    if "v5" in kind:
        target, n_cores = 1 << 20, 1        # v5e: 16 MiB scoped-VMEM default, ~0.82 TB/s HBM
    elif "v6" in kind:
        target, n_cores = 2 << 20, 1        # v6e: >=1-2 MiB tiles already ~86% of roofline
    elif "7" in kind:
        target, n_cores = 4 << 20, 2        # v7x: 3.2 TB/s HBM, 2 TCs, 32 MiB scoped VMEM
    try:
        # v7x is the only generation with <= 64 MiB physical VMEM per TensorCore.
        if pltpu.get_tpu_info().vmem_capacity_bytes <= (64 << 20):
            target, n_cores = 4 << 20, 2
    except Exception:
        pass
    return target, n_cores


# ----------------------------------------------------------------------------
# PE table construction (mirrors register_buffer('pe', ...) in __init__)
# ----------------------------------------------------------------------------
def _build_pe_table(d_model: int, max_len: int = 200) -> jnp.ndarray:
    """Deterministic sinusoidal PE table, shape (1, max_len, d_model), float32."""
    position = jnp.arange(max_len, dtype=jnp.float32)[:, None]            # (max_len, 1)
    div_term = jnp.exp(
        jnp.arange(0, d_model, 2, dtype=jnp.float32)
        * (-math.log(10000.0) / d_model)
    )                                                                      # (d_model/2,)
    angles = position * div_term                                           # (max_len, d_model/2)
    pe = jnp.zeros((max_len, d_model), dtype=jnp.float32)
    pe = pe.at[:, 0::2].set(jnp.sin(angles))
    pe = pe.at[:, 1::2].set(jnp.cos(angles))
    return pe[None, :, :]                                                  # (1, max_len, d_model)


# ----------------------------------------------------------------------------
# Kernel
# ----------------------------------------------------------------------------
def _pe_add_kernel(x_ref, pe_ref, o_ref):
    # x_ref/o_ref: (block_b, block_r, 128) lane-dense tiles of the input/output
    # pe_ref:      (1, block_r, 128)       positional-encoding tile, bcast over batch
    o_ref[...] = x_ref[...] + pe_ref[...]
    # TODO(synk): dropout p=0.0 is an identity; no RNG masking is applied.


def _pe_add_lane_dense(x_in: jnp.ndarray, pe_in: jnp.ndarray) -> jnp.ndarray:
    """x_in: (B, R, 128); pe_in: (1, R, 128). Returns x_in + pe_in."""
    B, R, L = x_in.shape                      # L == 128
    itemsize = jnp.dtype(x_in.dtype).itemsize
    target, n_cores = _chip_defaults()

    row_bytes = R * L * itemsize              # bytes per batch element

    if row_bytes <= target:
        # Whole per-batch row fits the budget: tile only along batch.
        block_r = R
        block_b = max(1, min(B, target // max(row_bytes, 1)))
    else:
        # Large rows: tile the lane-dense row axis so VMEM stays bounded
        # regardless of S*D. block_r must be a multiple of 8 (sublane rule).
        block_b = 1
        block_r = max(8, ((target // (L * itemsize)) // 8) * 8)
        block_r = min(block_r, R)

    # v7x only: make sure both TensorCores get work, but only when the add is
    # big enough that the extra grid step beats its ~0.35 us fixed cost. On
    # 1-TC v5e/v6e an extra step is purely sequential overhead, so skip it.
    total_bytes = 2 * B * R * L * itemsize    # x read + out write
    if n_cores >= 2 and total_bytes > (2 << 20):
        if pl.cdiv(B, block_b) * pl.cdiv(R, block_r) < n_cores:
            if R >= 16:
                # Prefer splitting the row axis: balanced even when B == 1.
                block_r = min(block_r, ((pl.cdiv(R, n_cores) + 7) // 8) * 8)
            elif B >= 2:
                block_b = min(block_b, pl.cdiv(B, n_cores))

    grid_r = pl.cdiv(R, block_r)
    grid_b = pl.cdiv(B, block_b)

    x_block = (block_b, block_r, L)
    pe_block = (1, block_r, L)

    return pl.pallas_call(
        _pe_add_kernel,
        out_shape=jax.ShapeDtypeStruct(x_in.shape, x_in.dtype),
        grid_spec=pltpu.PrefetchScalarGridSpec(
            num_scalar_prefetch=0,
            # r outer, b inner: the PE block index is constant along the inner
            # (batch) axis, so each PE r-slab is DMA'd once and stays resident
            # in VMEM while all batch blocks stream past it.
            grid=(grid_r, grid_b),
            in_specs=[
                pl.BlockSpec(x_block, lambda r, b: (b, r, 0)),
                pl.BlockSpec(pe_block, lambda r, b: (0, r, 0)),
            ],
            out_specs=pl.BlockSpec(x_block, lambda r, b: (b, r, 0)),
        ),
        compiler_params=pltpu.CompilerParams(
            dimension_semantics=("parallel", "parallel"),
        ),
    )(x_in, pe_in)


# ----------------------------------------------------------------------------
# Module wrapper (mirrors the PyTorch nn.Module)
# ----------------------------------------------------------------------------
class PositionalEncoding:
    """Pallas-TPU port of PositionalEncoding (dropout p=0.0 -> identity add)."""

    def __init__(self, d_model: int, dropout: float = 0.0, max_len: int = 200):
        if dropout != 0.0:
            raise NotImplementedError(
                "dropout p>0 not implemented")  # TODO(synk): dropout masking
        self.d_model = d_model
        self.max_len = max_len
        self.pe = _build_pe_table(d_model, max_len)   # float32 master table
        self._prepared = {}                           # (S, dtype) -> lane-dense PE slab

    def _prepare_pe(self, S: int, dtype, R: int, pad: int) -> jnp.ndarray:
        """Slice/cast/pad/reshape the PE table once per (S, dtype) and cache it."""
        key = (S, str(jnp.dtype(dtype)))
        slab = self._prepared.get(key)
        if slab is None:
            flat = self.pe[:, :S, :].astype(dtype).reshape(1, S * self.d_model)
            if pad:
                flat = jnp.pad(flat, ((0, 0), (0, pad)))
            slab = jax.block_until_ready(flat.reshape(1, R, 128))
            self._prepared[key] = slab
        return slab

    def __call__(self, x: jnp.ndarray) -> jnp.ndarray:
        B, S, D = x.shape
        if S > self.max_len:
            raise ValueError(
                f"sequence length {S} exceeds positional-encoding max_len {self.max_len}")
        if D != self.d_model:
            raise ValueError(f"d_model mismatch: x has {D}, module has {self.d_model}")

        SD = S * D
        pad = (-SD) % 128                     # pad flattened S*D up to a lane multiple
        R = (SD + pad) // 128

        pe_slab = self._prepare_pe(S, x.dtype, R, pad)

        # Lane-dense view of x: every store is a full unmasked 128-lane vst.
        x_flat = x.reshape(B, SD)
        if pad:
            # One extra streaming pass over x; still beats D<128 masked stores.
            x_flat = jnp.pad(x_flat, ((0, 0), (0, pad)))
        x_in = x_flat.reshape(B, R, 128)

        out = _pe_add_lane_dense(x_in, pe_slab)

        if pad:
            out = out.reshape(B, SD + pad)[:, :SD]
        return out.reshape(B, S, D)


if __name__ == "__main__":
    B, S, D = 2, 8, 32          # batch=2, seq=8, d_model=32
    MAX_LEN = 200

    key = jax.random.PRNGKey(0)
    x = jax.random.normal(key, (B, S, D), dtype=jnp.float32)

    module = PositionalEncoding(d_model=D, dropout=0.0, max_len=MAX_LEN)

    out = jax.block_until_ready(module(x))

    # sanity check against a plain-JAX reference of the same forward
    ref = x + module.pe[:, :S, :].astype(x.dtype)
    assert out.shape == (B, S, D)
    assert jnp.allclose(out, ref, atol=1e-6, rtol=1e-6), "mismatch vs reference"

    print("KERNEL_OK")
</pallas_src>

<mosaic_0001>
module attributes {stable_mosaic.version = 11 : i64} {
  func.func @_pe_add_kernel(%arg0: i32, %arg1: i32, %arg2: memref<2x2x128xf32, #tpu.memory_space<vmem>>, %arg3: memref<1x2x128xf32, #tpu.memory_space<vmem>>, %arg4: memref<2x2x128xf32, #tpu.memory_space<vmem>>) attributes {dimension_semantics = [#tpu.dimension_semantics<parallel>, #tpu.dimension_semantics<parallel>], iteration_bounds = array<i64: 1, 1>, scalar_prefetch = 0 : i64, scratch_operands = 0 : i64, tpu.core_type = #tpu.core_type<tc>, window_params = [{transform_indices = @transform_0, window_bounds = array<i64: 2, 2, 128>}, {transform_indices = @transform_1, window_bounds = array<i64: 1, 2, 128>}, {transform_indices = @transform_2, window_bounds = array<i64: 2, 2, 128>}]} {
    %c0 = arith.constant 0 : index
    %c0_0 = arith.constant 0 : index
    %c0_1 = arith.constant 0 : index
    %0 = vector.load %arg2[%c0, %c0_0, %c0_1] : memref<2x2x128xf32, #tpu.memory_space<vmem>>, vector<2x2x128xf32>
    %c0_2 = arith.constant 0 : index
    %c0_3 = arith.constant 0 : index
    %c0_4 = arith.constant 0 : index
    %1 = vector.load %arg3[%c0_2, %c0_3, %c0_4] : memref<1x2x128xf32, #tpu.memory_space<vmem>>, vector<1x2x128xf32>
    %2 = vector.broadcast %1 : vector<1x2x128xf32> to vector<2x2x128xf32>
    %3 = arith.addf %0, %2 : vector<2x2x128xf32>
    %c0_5 = arith.constant 0 : index
    %c0_6 = arith.constant 0 : index
    %c0_7 = arith.constant 0 : index
    %4 = vector.load %arg4[%c0_5, %c0_6, %c0_7] : memref<2x2x128xf32, #tpu.memory_space<vmem>>, vector<2x2x128xf32>
    tpu.vector_store %arg4[%c0_5, %c0_6, %c0_7], %3 {strides = array<i32>} : memref<2x2x128xf32, #tpu.memory_space<vmem>>, vector<2x2x128xf32>,
    return
  }
  func.func @transform_0(%arg0: i32, %arg1: i32) -> (i32, i32, i32) {
    %c0_i32 = arith.constant 0 : i32
    %c0_i32_0 = arith.constant 0 : i32
    return %arg1, %arg0, %c0_i32 : i32, i32, i32
  }
  func.func @transform_1(%arg0: i32, %arg1: i32) -> (i32, i32, i32) {
    %c0_i32 = arith.constant 0 : i32
    %c0_i32_0 = arith.constant 0 : i32
    %c0_i32_1 = arith.constant 0 : i32
    return %c0_i32, %arg0, %c0_i32_0 : i32, i32, i32
  }
  func.func @transform_2(%arg0: i32, %arg1: i32) -> (i32, i32, i32) {
    %c0_i32 = arith.constant 0 : i32
    %c0_i32_0 = arith.constant 0 : i32
    return %arg1, %arg0, %c0_i32 : i32, i32, i32
  }
}

</mosaic_0001>

<bundles_post_ra>
// kernel: tpu_custom_call.1
= control target key start
LH: loop header
LB: loop body
LE: loop exit
PB: predicated region body
PF: predicated region fallthrough
CT: control target
= control target key end

     0   :  { %7 = vsyncpa [#allocation3], 0  ;;  %s154_s0 = inlined_call_operand.hbm [shape: f32[2,2,128], index: 0, kind: input, shape index: {}]   ;;  %s155_s1 = inlined_call_operand.vmem [shape: f32[1,2,128], index: 1, kind: input, shape index: {}]   ;;  %s156_s2 = inlined_call_operand.hbm [shape: f32[2,2,128], index: 2, kind: output, shape index: {}]  }
   0x1   :  { %8 = vsyncpa [#allocation4], 0  ;;  %s102_s9 = smov [#allocation2]   ;;  %s54_s13 = scalar_lea.hbm %s154_s0, 64 }
   0x2   :  { %s14_s10 = sshll.u32 %s102_s9, 4  ;;  %p55_p0 = scmp.ne.s32.totalorder %s154_s0, %s54_s13  ;;  %s15_s10 = int_to_ptr.vmem [resolvable:$true] %s14_s10 }
   0x3   :  { %p58_p1 = scmp.lt.u32.totalorder %s54_s13, %s154_s0 }
   0x5   :  { %p60_p2 = pnand %p58_p1, %p55_p0 }
   0x7   :  { %63 = shalt.err (!%p60_p2)
}
   0x8   :  { %s64_s18 = scalar_lea.vmem %s15_s10, 64  ;;  %p69_p4 = scmp.lt.s32.totalorder %s15_s10, %s15_s10 }
   0x9   :  { %p65_p3 = scmp.ne.s32.totalorder %s15_s10, %s64_s18  ;;  %p70_p5 = scmp.lt.s32.totalorder %s64_s18, %s64_s18 }
   0xb   :  { %p71_p6 = por %p70_p5, %p69_p4 }
   0xd   :  { %p72_p7 = pnand %p71_p6, %p65_p3 }
   0xf   :  { %75 = shalt.err (!%p72_p7)
}
  0x10   :  { %s103_s19 = smov 32   ;;  %s104_s20 = smov 2  }
  0x11   :  { %20 = dma.hbm_to_vmem [thread:$0]  %s154_s0, 64, %s15_s10, [#allocation3], %s103_s19, %s103_s19, %s104_s20  }
  0x12   :  { %98 = dma.done.wait [#allocation3], 64  }
  0x13   :  { %99 = vsyncadd [#allocation3], 4294967232  ;;  %s105_s23 = smov [#allocation5]   ;;  %v26_v0 = vld [vmem:[#allocation2] sm:$0x3] }
  0x14   :  { %s38_s24 = sshll.u32 %s105_s23, 4  ;;  %v28_v1 = vld [vmem:[%s155_s1] sm:$0x3]  ;;  %v27_v2 = vld [vmem:[#allocation2 + $0x2] sm:$0x3]  ;;  %s39_s24 = int_to_ptr.vmem [resolvable:$true] %s38_s24 }
  0x15   :  { %v29_v3 = vadd.f32 %v28_v1, %v26_v0  ;;  %v30_v4 = vadd.f32 %v28_v1, %v27_v2  ;;  %s76_s27 = scalar_lea.vmem %s39_s24, 64  ;;  %p81_p9 = scmp.lt.s32.totalorder %s39_s24, %s39_s24 }
  0x16   :  { %p77_p8 = scmp.ne.s32.totalorder %s39_s24, %s76_s27  ;;  %p82_p10 = scmp.lt.s32.totalorder %s76_s27, %s76_s27 }
  0x17   :  { %31 = vst [vmem:[#allocation5] sm:$0x3] %v29_v3  ;;  %32 = vst [vmem:[#allocation5 + $0x2] sm:$0x3] %v30_v4 }
  0x18   :  { %p83_p11 = por %p82_p10, %p81_p9 }
  0x1a   :  { %p84_p12 = pnand %p83_p11, %p77_p8 }
  0x1c   :  { %87 = shalt.err (!%p84_p12)
}
  0x1d   :  { %s88_s29 = scalar_lea.hbm %s156_s2, 64 }
  0x1e   :  { %p89_p13 = scmp.ne.s32.totalorder %s156_s2, %s88_s29  ;;  %p92_p0 = scmp.lt.u32.totalorder %s88_s29, %s156_s2 }
  0x20   :  { %p94_p1 = pnand %p92_p0, %p89_p13 }
  0x22   :  { %97 = shalt.err (!%p94_p1)
}
  0x23   :  { %44 = dma.vmem_to_hbm [thread:$0]  %s39_s24, 64, %s156_s2, [#allocation4], %s103_s19, %s103_s19, %s104_s20  }
  0x24   :  { %100 = dma.done.wait [#allocation4], 64  }
  0x25   :  { %101 = vsyncadd [#allocation4], 4294967232 }
  0x26   :  { %48 = vsyncpa [#allocation3], 1 }
  0x27   :  { %49 = vsyncpa [#allocation4], 1 }

</bundles_post_ra>
